<compile_context>
chip_gen: v5e
topology: v5e:2x2
jax: 0.10.0
libtpu: 0.0.40
codegen_flags: <defaults>
</compile_context>

<pallas_src>
import functools

import jax
import jax.numpy as jnp
from jax.experimental import pallas as pl
from jax.experimental.pallas import tpu as pltpu


def _ciou_kernel(masks_ref, mask_ref, rsum_ref, out_ref, *, num_planes):
    """One grid step == TB batch elements. Writes (TB, 128) of per-item (1 - iou)."""
    # Channel max first, in the input dtype; ((x+1)/2).clamp(0) is monotone, so
    # hoisting it past the max is bit-identical and runs on one plane instead of N.
    ch = masks_ref[:, 0]                                      # (TB, R, 128), in dtype
    for n in range(1, num_planes):                            # static unroll (small N)
        ch = jnp.maximum(ch, masks_ref[:, n])
    fake = jnp.maximum((ch.astype(jnp.float32) + 1.0) * 0.5, 0.0)   # (TB, R, 128) f32

    real = mask_ref[...]                                      # (R, 128) f32 {0,1}
    inter = fake * real                                       # broadcast over TB

    # Sublane-axis reduce first -> lane-dense (TB, 128), then lane reduce -> (TB, 1).
    inter_sum = jnp.sum(jnp.sum(inter, axis=1), axis=-1, keepdims=True)
    fake_sum = jnp.sum(jnp.sum(fake, axis=1), axis=-1, keepdims=True)

    # union never materialized: union = fake_sum + sum(real) - inter_sum.
    union = fake_sum + rsum_ref[0] - inter_sum
    # NOTE: like the PyTorch module, no guard for union == 0 (same NaN behavior).
    res = 1.0 - inter_sum / union                             # (TB, 1)

    # Lane-dense (unmasked) store; wrapper reads lane 0.
    out_ref[...] = jnp.broadcast_to(res, out_ref.shape)


def _round_up(x, m):
    return ((x + m - 1) // m) * m


def ciou_loss(masks, mask, *, tb=None):
    """masks: (B, N, H, W); mask: (H, W) binary (H=W=32). Returns scalar f32 loss."""
    B, N, H, W = masks.shape
    assert mask.shape == (H, W)
    assert (H * W) % 128 == 0, "spatial size must flatten to whole 128-lane rows"
    R = (H * W) // 128                                        # 8 for 32x32

    # Lane-dense layout: row-major flatten of each image into (R, 128) = one vreg.
    masks_ld = masks.reshape(B, N, R, 128)
    mask_ld = mask.astype(jnp.float32).reshape(R, 128)
    real_sum = jnp.sum(mask_ld).reshape(1).astype(jnp.float32)   # tiny; SMEM scalar

    in_isz = masks_ld.dtype.itemsize
    plane_bytes = R * 128 * 4                                 # one f32 image plane
    bytes_per_b_in = N * R * 128 * in_isz
    # Per-batch-element VMEM cost: double-buffered input block + ~4 f32 elementwise
    # intermediates (ch / fake / inter / upcast temp) + double-buffered output row.
    per_b_vmem = 2 * bytes_per_b_in + 4 * plane_bytes + 2 * 128 * 4

    try:
        vmem_cap = int(pltpu.get_tpu_info().vmem_capacity_bytes)
    except Exception:
        vmem_cap = 64 << 20                                   # conservative (v7x)

    if tb is None:
        budget = vmem_cap // 3                                # leave pipeline headroom
        tb = max(8, budget // per_b_vmem)
        tb = min(tb, 256)                                     # past HBM-roofline knee

    if B <= 8:
        TB = B                                                # single (full-dim) block
    else:
        TB = max(8, (int(tb) // 8) * 8)                       # sublane-aligned block
        # Keep >= 2 grid blocks so the "parallel" axis shards across both v7x TCs.
        TB = min(TB, _round_up(pl.cdiv(B, 2), 8))
    nblk = pl.cdiv(B, TB)                                     # ragged last block is OK

    vmem_needed = TB * per_b_vmem + (2 << 20)
    vmem_limit = int(min(max(vmem_needed, 16 << 20), (3 * vmem_cap) // 4))

    kernel = functools.partial(_ciou_kernel, num_planes=N)

    out = pl.pallas_call(
        kernel,
        out_shape=jax.ShapeDtypeStruct((B, 128), jnp.float32),
        grid_spec=pltpu.PrefetchScalarGridSpec(
            num_scalar_prefetch=0,
            grid=(nblk,),
            in_specs=[
                # TB batch elements per step, images kept lane-dense (R, 128).
                pl.BlockSpec((TB, N, R, 128), lambda i: (i, 0, 0, 0)),
                # fixed mask, same (tiny) block every step
                pl.BlockSpec((R, 128), lambda i: (0, 0)),
                # precomputed sum(mask) as an SMEM scalar
                pl.BlockSpec(memory_space=pltpu.MemorySpace.SMEM),
            ],
            out_specs=pl.BlockSpec((TB, 128), lambda i: (i, 0)),
        ),
        compiler_params=pltpu.CompilerParams(
            dimension_semantics=("parallel",),   # no cross-step state -> 2-TC friendly
            vmem_limit_bytes=vmem_limit,
        ),
    )(masks_ld, mask_ld, real_sum)

    # Ragged-block garbage rows (if any) live past index B and are sliced off here.
    return jnp.mean(out[:B, 0])


def ciou_loss_ref(masks, mask):
    """Pure-JAX reference mirroring the PyTorch forward."""
    masks = masks.astype(jnp.float32)
    m = jnp.clip((masks + 1.0) / 2.0, 0.0)
    fake = jnp.max(m, axis=1)                                 # (B, H, W)
    real = mask.astype(jnp.float32)[None]                     # (1, H, W)
    B = masks.shape[0]
    inter = (fake * real).reshape(B, -1).sum(axis=1)
    union = (fake + real - fake * real).reshape(B, -1).sum(axis=1)
    return jnp.mean(1.0 - inter / union)


def make_mask(h=32, w=32):
    # Deterministic synthetic 32x32 binary mask (stands in for the file the
    # PyTorch __init__ would load): a centered filled square of ones.
    # TODO(synk): real module loads the mask from a png/txt file at __init__.
    rows = jnp.arange(h)[:, None]
    cols = jnp.arange(w)[None, :]
    inside = (rows >= 8) & (rows < 24) & (cols >= 8) & (cols < 24)
    return inside.astype(jnp.float32)


if __name__ == "__main__":
    key = jax.random.PRNGKey(0)
    H, W = 32, 32                                             # mask fixed at 32x32
    mask = make_mask(H, W)

    # Small canonical case (single block).
    B, N = 2, 4
    masks = jax.random.normal(key, (B, N, H, W), dtype=jnp.float32)
    loss = jax.block_until_ready(ciou_loss(masks, mask))
    ref = jax.block_until_ready(ciou_loss_ref(masks, mask))
    assert jnp.allclose(loss, ref, rtol=1e-5, atol=1e-5), (loss, ref)

    # Multi-block + ragged final block path (no wrapper padding).
    B2 = 12
    masks2 = jax.random.normal(jax.random.PRNGKey(1), (B2, N, H, W), dtype=jnp.float32)
    loss2 = jax.block_until_ready(ciou_loss(masks2, mask, tb=8))
    ref2 = jax.block_until_ready(ciou_loss_ref(masks2, mask))
    assert jnp.allclose(loss2, ref2, rtol=1e-5, atol=1e-5), (loss2, ref2)

    print("KERNEL_OK")
</pallas_src>

<mosaic_0001>
module attributes {stable_mosaic.version = 11 : i64} {
  func.func @_ciou_kernel(%arg0: i32, %arg1: memref<2x4x8x128xf32, #tpu.memory_space<vmem>>, %arg2: memref<8x128xf32, #tpu.memory_space<vmem>>, %arg3: memref<1xf32, #tpu.memory_space<smem>>, %arg4: memref<2x128xf32, #tpu.memory_space<vmem>>) attributes {dimension_semantics = [#tpu.dimension_semantics<parallel>], iteration_bounds = array<i64: 1>, scalar_prefetch = 0 : i64, scratch_operands = 0 : i64, tpu.core_type = #tpu.core_type<tc>, window_params = [{transform_indices = @transform_0, window_bounds = array<i64: 2, 4, 8, 128>}, {pipeline_mode = #tpu.pipeline_mode<synchronous>, transform_indices = @transform_1, window_bounds = array<i64: 8, 128>}, {transform_indices = @transform_2, window_bounds = array<i64: 1>}, {transform_indices = @transform_3, window_bounds = array<i64: 2, 128>}]} {
    %c0 = arith.constant 0 : index
    %c0_0 = arith.constant 0 : index
    %c0_1 = arith.constant 0 : index
    %c0_2 = arith.constant 0 : index
    %0 = vector.load %arg1[%c0, %c0_0, %c0_1, %c0_2] : memref<2x4x8x128xf32, #tpu.memory_space<vmem>>, vector<2x1x8x128xf32>
    %1 = vector.shape_cast %0 : vector<2x1x8x128xf32> to vector<2x8x128xf32>
    %c0_3 = arith.constant 0 : index
    %c1 = arith.constant 1 : index
    %c0_4 = arith.constant 0 : index
    %c0_5 = arith.constant 0 : index
    %2 = vector.load %arg1[%c0_3, %c1, %c0_4, %c0_5] : memref<2x4x8x128xf32, #tpu.memory_space<vmem>>, vector<2x1x8x128xf32>
    %3 = vector.shape_cast %2 : vector<2x1x8x128xf32> to vector<2x8x128xf32>
    %4 = arith.maximumf %1, %3 : vector<2x8x128xf32>
    %c0_6 = arith.constant 0 : index
    %c2 = arith.constant 2 : index
    %c0_7 = arith.constant 0 : index
    %c0_8 = arith.constant 0 : index
    %5 = vector.load %arg1[%c0_6, %c2, %c0_7, %c0_8] : memref<2x4x8x128xf32, #tpu.memory_space<vmem>>, vector<2x1x8x128xf32>
    %6 = vector.shape_cast %5 : vector<2x1x8x128xf32> to vector<2x8x128xf32>
    %7 = arith.maximumf %4, %6 : vector<2x8x128xf32>
    %c0_9 = arith.constant 0 : index
    %c3 = arith.constant 3 : index
    %c0_10 = arith.constant 0 : index
    %c0_11 = arith.constant 0 : index
    %8 = vector.load %arg1[%c0_9, %c3, %c0_10, %c0_11] : memref<2x4x8x128xf32, #tpu.memory_space<vmem>>, vector<2x1x8x128xf32>
    %9 = vector.shape_cast %8 : vector<2x1x8x128xf32> to vector<2x8x128xf32>
    %10 = arith.maximumf %7, %9 : vector<2x8x128xf32>
    %cst = arith.constant 1.000000e+00 : f32
    %11 = vector.broadcast %cst : f32 to vector<2x8x128xf32>
    %12 = arith.addf %10, %11 : vector<2x8x128xf32>
    %cst_12 = arith.constant 5.000000e-01 : f32
    %13 = vector.broadcast %cst_12 : f32 to vector<2x8x128xf32>
    %14 = arith.mulf %12, %13 : vector<2x8x128xf32>
    %cst_13 = arith.constant 0.000000e+00 : f32
    %15 = vector.broadcast %cst_13 : f32 to vector<2x8x128xf32>
    %16 = arith.maximumf %14, %15 : vector<2x8x128xf32>
    %c0_14 = arith.constant 0 : index
    %c0_15 = arith.constant 0 : index
    %17 = vector.load %arg2[%c0_14, %c0_15] : memref<8x128xf32, #tpu.memory_space<vmem>>, vector<8x128xf32>
    %18 = vector.shape_cast %17 : vector<8x128xf32> to vector<1x8x128xf32>
    %19 = vector.broadcast %18 : vector<1x8x128xf32> to vector<2x8x128xf32>
    %20 = arith.mulf %16, %19 : vector<2x8x128xf32>
    %cst_16 = arith.constant dense<0.000000e+00> : vector<2x128xf32>
    %21 = vector.multi_reduction <add>, %20, %cst_16 [1] : vector<2x8x128xf32> to vector<2x128xf32>
    %cst_17 = arith.constant dense<0.000000e+00> : vector<2xf32>
    %22 = vector.multi_reduction <add>, %21, %cst_17 [1] : vector<2x128xf32> to vector<2xf32>
    %23 = vector.shape_cast %22 : vector<2xf32> to vector<2x1xf32>
    %cst_18 = arith.constant dense<0.000000e+00> : vector<2x128xf32>
    %24 = vector.multi_reduction <add>, %16, %cst_18 [1] : vector<2x8x128xf32> to vector<2x128xf32>
    %cst_19 = arith.constant dense<0.000000e+00> : vector<2xf32>
    %25 = vector.multi_reduction <add>, %24, %cst_19 [1] : vector<2x128xf32> to vector<2xf32>
    %26 = vector.shape_cast %25 : vector<2xf32> to vector<2x1xf32>
    %c0_20 = arith.constant 0 : index
    %27 = memref.load %arg3[%c0_20] : memref<1xf32, #tpu.memory_space<smem>>
    %28 = vector.broadcast %27 : f32 to vector<2x1xf32>
    %29 = arith.addf %26, %28 : vector<2x1xf32>
    %30 = arith.subf %29, %23 : vector<2x1xf32>
    %31 = arith.divf %23, %30 : vector<2x1xf32>
    %cst_21 = arith.constant 1.000000e+00 : f32
    %32 = vector.broadcast %cst_21 : f32 to vector<2x1xf32>
    %33 = arith.subf %32, %31 : vector<2x1xf32>
    %34 = vector.shape_cast %33 : vector<2x1xf32> to vector<2x1xf32>
    %35 = vector.broadcast %34 : vector<2x1xf32> to vector<2x128xf32>
    %c0_22 = arith.constant 0 : index
    %c0_23 = arith.constant 0 : index
    %36 = vector.load %arg4[%c0_22, %c0_23] : memref<2x128xf32, #tpu.memory_space<vmem>>, vector<2x128xf32>
    tpu.vector_store %arg4[%c0_22, %c0_23], %35 {strides = array<i32>} : memref<2x128xf32, #tpu.memory_space<vmem>>, vector<2x128xf32>,
    return
  }
  func.func @transform_0(%arg0: i32) -> (i32, i32, i32, i32) {
    %c0_i32 = arith.constant 0 : i32
    %c0_i32_0 = arith.constant 0 : i32
    %c0_i32_1 = arith.constant 0 : i32
    %c0_i32_2 = arith.constant 0 : i32
    return %arg0, %c0_i32, %c0_i32_0, %c0_i32_1 : i32, i32, i32, i32
  }
  func.func @transform_1(%arg0: i32) -> (i32, i32) {
    %c0_i32 = arith.constant 0 : i32
    %c0_i32_0 = arith.constant 0 : i32
    %c0_i32_1 = arith.constant 0 : i32
    return %c0_i32, %c0_i32_0 : i32, i32
  }
  func.func @transform_2(%arg0: i32) -> i32 {
    %c0_i32 = arith.constant 0 : i32
    %c0_i32_0 = arith.constant 0 : i32
    return %c0_i32 : i32
  }
  func.func @transform_3(%arg0: i32) -> (i32, i32) {
    %c0_i32 = arith.constant 0 : i32
    %c0_i32_0 = arith.constant 0 : i32
    return %arg0, %c0_i32 : i32, i32
  }
}

</mosaic_0001>

<bundles_post_ra>
// kernel: tpu_custom_call.1
= control target key start
LH: loop header
LB: loop body
LE: loop exit
PB: predicated region body
PF: predicated region fallthrough
CT: control target
= control target key end

     0   :  { %9 = vsyncpa [#allocation4], 0  ;;  %s273_s0 = inlined_call_operand.hbm [shape: f32[2,4,8,128], index: 0, kind: input, shape index: {}]   ;;  %s274_s1 = inlined_call_operand.hbm [shape: f32[8,128], index: 1, kind: input, shape index: {}]   ;;  %s275_s2 = inlined_call_operand.<no memory space> [shape: f32[1], index: 2, kind: input, shape index: {}]   ;;  %s276_s3 = inlined_call_operand.hbm [shape: f32[2,128], index: 3, kind: output, shape index: {}]  }
   0x1   :  { %10 = vsyncpa [#allocation7], 0 }
   0x2   :  { %11 = vsyncpa [#allocation5], 0  ;;  %s16_s14 = sshll.u32 %s273_s0, 4  ;;  %s236_s15 = smov [#allocation3]   ;;  %s17_s14 = int_to_ptr.hbm [resolvable:$true] %s16_s14 }
   0x3   :  { %s18_s16 = sshll.u32 %s236_s15, 4  ;;  %s30_s19 = sshll.u32 %s274_s1, 4  ;;  %s19_s16 = int_to_ptr.vmem [resolvable:$true] %s18_s16  ;;  %s31_s19 = int_to_ptr.hbm [resolvable:$true] %s30_s19 }
   0x4   :  { %s237_s20 = smov 128   ;;  %s238_s21 = smov 8  }
   0x5   :  { %24 = dma.hbm_to_vmem [thread:$0]  %s17_s14, 1024, %s19_s16, [#allocation4], %s237_s20, %s237_s20, %s238_s21  }
   0x6   :  { %s239_s22 = smov [#allocation6]  }
   0x7   :  { %s32_s23 = sshll.u32 %s239_s22, 4  ;;  %s33_s23 = int_to_ptr.vmem [resolvable:$true] %s32_s23 }
   0x8   :  { %35 = dma.hbm_to_vmem [thread:$0]  %s31_s19, 128, %s33_s23, [#allocation7]  }
   0x9   :  { %230 = dma.done.wait [#allocation4], 1024  }
   0xa   :  { %231 = vsyncadd [#allocation4], 4294966272 }
   0xb   :  { %232 = dma.done.wait [#allocation7], 128  }
   0xc   :  { %233 = vsyncadd [#allocation7], 4294967168  ;;  %v46_v0 = vld [vmem:[#allocation3] sm:$0xff]  ;;  %v49_v2 = vld [vmem:[#allocation3 + $0x8] sm:$0xff]  ;;  %vm86_vm0 = vcmask 1041409   ;;  %vm89_vm1 = vcmask 1041408   ;;  %v113_v52 = vstv %s275_s2 }
   0xd   :  { %v47_v1 = vld [vmem:[#allocation3 + $0x20] sm:$0xff]  ;;  %v50_v3 = vld [vmem:[#allocation3 + $0x28] sm:$0xff]  ;;  %v51_v4 = vmax.f32 %v46_v0, %v49_v2  ;;  %v54_v5 = vld [vmem:[#allocation3 + $0x10] sm:$0xff]  ;;  %s240_s24 = smov [#allocation8]   ;;  %s140_s27 = sshll.u32 %s276_s3, 4  ;;  %s141_s27 = int_to_ptr.hbm [resolvable:$true] %s140_s27 }
   0xe   :  { %v55_v6 = vld [vmem:[#allocation3 + $0x30] sm:$0xff]  ;;  %v52_v7 = vmax.f32 %v47_v1, %v50_v3  ;;  %v59_v8 = vld [vmem:[#allocation3 + $0x18] sm:$0xff]  ;;  %v69_v18 = vld [vmem:[#allocation6] sm:$0xff]  ;;  %s138_s2 = sshll.u32 %s240_s24, 4  ;;  %s139_s2 = int_to_ptr.vmem [resolvable:$true] %s138_s2 }
   0xf   :  { %v56_v9 = vmax.f32 %v51_v4, %v54_v5  ;;  %v60_v10 = vld [vmem:[#allocation3 + $0x38] sm:$0xff] }
  0x10   :  { %v57_v11 = vmax.f32 %v52_v7, %v55_v6 }
  0x11   :  { %v61_v12 = vmax.f32 %v56_v9, %v59_v8 }
  0x12   :  { %v62_v13 = vmax.f32 %v57_v11, %v60_v10 }
  0x13   :  { %v63_v14 = vadd.f32 1.0, %v61_v12 }
  0x14   :  { %v64_v15 = vadd.f32 1.0, %v62_v13 }
  0x15   :  { %v65_v16 = vmul.f32 0.5, %v63_v14 }
  0x16   :  { %v66_v17 = vmul.f32 0.5, %v64_v15 }
  0x17   :  { %v67_v19 = vmax.f32 %v65_v16, 0.0 }
  0x18   :  { %v68_v20 = vmax.f32 %v66_v17, 0.0 }
  0x19   :  { %v93_v21 = vrot.slane %v67_v19, 4  ;;  %v70_v22 = vmul.f32 %v69_v18, %v67_v19 }
  0x1a   :  { %v99_v23 = vrot.slane %v68_v20, 4  ;;  %v71_v24 = vmul.f32 %v69_v18, %v68_v20 }
  0x1b   :  { %v94_v25 = vadd.f32 %v93_v21, %v67_v19  ;;  %v72_v26 = vrot.slane %v70_v22, 4 }
  0x1c   :  { %v100_v27 = vadd.f32 %v99_v23, %v68_v20  ;;  %v78_v28 = vrot.slane %v71_v24, 4 }
  0x1d   :  { %v95_v29 = vrot.slane %v94_v25, 2  ;;  %v73_v30 = vadd.f32 %v72_v26, %v70_v22 }
  0x1e   :  { %v101_v31 = vrot.slane %v100_v27, 2  ;;  %v79_v32 = vadd.f32 %v78_v28, %v71_v24 }
  0x1f   :  { %v96_v33 = vadd.f32 %v95_v29, %v94_v25  ;;  %v74_v34 = vrot.slane %v73_v30, 2 }
  0x20   :  { %v102_v35 = vadd.f32 %v101_v31, %v100_v27  ;;  %v80_v36 = vrot.slane %v79_v32, 2 }
  0x21   :  { %v97_v37 = vrot.slane %v96_v33, 1  ;;  %v75_v38 = vadd.f32 %v74_v34, %v73_v30 }
  0x22   :  { %v103_v39 = vrot.slane %v102_v35, 1  ;;  %v81_v40 = vadd.f32 %v80_v36, %v79_v32 }
  0x23   :  { %v98_v41 = vadd.f32 %v97_v37, %v96_v33  ;;  %v76_v42 = vrot.slane %v75_v38, 1 }
  0x24   :  { %v104_v43 = vadd.f32 %v103_v39, %v102_v35  ;;  %v82_v44 = vrot.slane %v81_v40, 1 }
  0x25   :  { %v77_v46 = vadd.f32 %v76_v42, %v75_v38 }
  0x26   :  { %v107_v45 = vsel %vm86_vm0, %v104_v43, %v98_v41  ;;  %v83_v47 = vadd.f32 %v82_v44, %v81_v40 }
  0x27   :  { %v109_v48 = vsel %vm89_vm1, %v107_v45, 0.0 }
  0x28   :  { %110 = vadd.xlane.f32.xlu0 %v109_v48  ;;  %v87_v49 = vsel %vm86_vm0, %v83_v47, %v77_v46 }
  0x29   :  { %v90_v50 = vsel %vm89_vm1, %v87_v49, 0.0 }
  0x30   :  { %91 = vadd.xlane.f32.xlu0 %v90_v50 }
  0x9b   :  { %v111_v51 = vpop.xlane.xlu0 %110 }
  0x9c   :  { %v114_v53 = vadd.f32 %v113_v52, %v111_v51 }
  0xa3   :  { %v92_v54 = vpop.xlane.xlu0 %91 }
  0xa4   :  { %v115_v55 = vsub.f32 %v114_v53, %v92_v54 }
  0xa6   :  { %156 = vrcp.f32 %v115_v55  ;;  %v127_v59 = vand.u32 2147483648, %v115_v55  ;;  %v125_v61 = vand.u32 2147483647, %v115_v55  ;;  %vm121_vm3 = vweird.f32 %v115_v55 }
  0xa8   :  { %v128_v63 = vor.u32 1.1754944e-38, %v127_v59  ;;  %vm126_vm5 = vcmp.eq.f32.partialorder %v125_v61, 8.507059e+37 }
  0xac   :  { %v157_v56 = vpop.eup %156 }
  0xad   :  { %v117_v57 = vmul.f32 %v157_v56, %v115_v55  ;;  %vm122_vm2 = vweird.f32 %v157_v56 }
  0xae   :  { %vm123_vm4 = vmor %vm121_vm3, %vm122_vm2 }
  0xaf   :  { %v118_v58 = vsub.f32 1.0, %v117_v57 }
  0xb1   :  { %v119_v60 = vmul.f32 %v157_v56, %v118_v58 }
  0xb3   :  { %v120_v62 = vadd.f32 %v157_v56, %v119_v60 }
  0xb5   :  { %v124_v0 = vsel %vm123_vm4, %v157_v56, %v120_v62 }
  0xb6   :  { %v129_v1 = vsel %vm126_vm5, %v128_v63, %v124_v0 }
  0xb7   :  { %v130_v2 = vmul.f32 %v129_v1, %v92_v54 }
  0xb9   :  { %v131_v3 = vsub.f32 1.0, %v130_v2 }
  0xbb   :  { %132 = vst [vmem:[#allocation8] sm:$0x3] %v131_v3 }
  0xbc   :  { %143 = dma.vmem_to_hbm [thread:$0]  %s139_s2, 32, %s141_s27, [#allocation5]  }
  0xbd   :  { %234 = dma.done.wait [#allocation5], 32  }
  0xbe   :  { %235 = vsyncadd [#allocation5], 4294967264 }
  0xbf   :  { %148 = vsyncpa [#allocation4], 1 }
  0xc0   :  { %149 = vsyncpa [#allocation7], 1 }
  0xc1   :  { %150 = vsyncpa [#allocation5], 1 }

</bundles_post_ra>
